<compile_context>
chip_gen: v7x
topology: tpu7x:2x2x1
jax: 0.10.0
libtpu: 0.0.40
codegen_flags: <defaults>
</compile_context>

<pallas_src>
import functools

import jax
import jax.numpy as jnp
from jax import lax
from jax.experimental import pallas as pl
from jax.experimental.pallas import tpu as pltpu


def _layer_norm(x, w, b, eps=1e-5):
    # PyTorch LayerNorm: biased variance over last dim, eps inside rsqrt.
    mu = jnp.mean(x, axis=-1, keepdims=True)
    var = jnp.mean((x - mu) ** 2, axis=-1, keepdims=True)
    return (x - mu) * lax.rsqrt(var + eps) * w + b


def _mish(x):
    # mish(x) = x * tanh(softplus(x));  softplus via logaddexp for stability.
    return x * jnp.tanh(jnp.logaddexp(x, 0.0))


# --------------------- Kernel 1: LN1 + fused QKV projection ---------------------
def qkv_kernel(x_ref, ln1w_ref, ln1b_ref, wqkv_ref, bqkv_ref,
               q_ref, k_ref, v_ref):
    x = x_ref[0]                                        # (ts, H)
    H = q_ref.shape[-1]
    xn = _layer_norm(x, ln1w_ref[...], ln1b_ref[...])
    # Single MXU pass over the fused [H, 3H] weight (3x larger N dimension).
    qkv = jnp.dot(xn, wqkv_ref[...], preferred_element_type=jnp.float32)
    qkv = qkv + bqkv_ref[...]
    q_ref[0] = qkv[:, 0:H].astype(q_ref.dtype)          # already pre-scaled
    k_ref[0] = qkv[:, H:2 * H].astype(k_ref.dtype)
    v_ref[0] = qkv[:, 2 * H:3 * H].astype(v_ref.dtype)


# ---------- Kernel 2: causal MHA + residual + LN2 + FeedForward + residual ----------
def attn_ffn_kernel(n_heads, head_dim, tq,
                    x_ref, q_ref, k_ref, v_ref,
                    wp_ref, bp_ref, ln2w_ref, ln2b_ref,
                    w1_ref, b1_ref, w2_ref, b2_ref,
                    o_ref):
    x = x_ref[0]        # (tq, H)   residual for this q tile
    q = q_ref[0]        # (tq, H)   already scaled by 1/sqrt(head_dim)
    k = k_ref[0]        # (S, H)
    v = v_ref[0]        # (S, H)
    S = k.shape[0]

    # Causal mask for this q tile (global row index = tile offset + local row).
    row0 = pl.program_id(1) * tq
    rows = row0 + lax.broadcasted_iota(jnp.int32, (tq, S), 0)
    cols = lax.broadcasted_iota(jnp.int32, (tq, S), 1)
    causal = cols <= rows                               # torch.tril semantics

    # Per-head attention; context is folded straight into the output projection
    # so no (tq, H) concatenate along the lane axis is materialized.
    attn_out = jnp.zeros(x.shape, jnp.float32)
    for h in range(n_heads):                            # n_heads is small & static
        lo = h * head_dim
        qh = q[:, lo:lo + head_dim]                     # (tq, hd)
        kh = k[:, lo:lo + head_dim]                     # (S, hd)
        vh = v[:, lo:lo + head_dim]                     # (S, hd)
        # q @ k.T (contract last dims, no explicit transpose).
        s = lax.dot_general(qh, kh, (((1,), (1,)), ((), ())),
                            preferred_element_type=jnp.float32)   # (tq, S)
        s = jnp.where(causal, s, jnp.float32(-10000.0))
        m = jnp.max(s, axis=-1, keepdims=True)
        e = jnp.exp(s - m)
        p = e / jnp.sum(e, axis=-1, keepdims=True)      # exact softmax (f32)
        # attn_dropout is identity in eval mode.
        ctx_h = jnp.dot(p, vh, preferred_element_type=jnp.float32)   # (tq, hd)
        attn_out = attn_out + jnp.dot(ctx_h, wp_ref[lo:lo + head_dim, :],
                                      preferred_element_type=jnp.float32)
    attn_out = attn_out + bp_ref[...]
    # resid_dropout is identity in eval mode.

    x1 = x + attn_out

    # ---- LN2 + FeedForward ----
    xn = _layer_norm(x1, ln2w_ref[...], ln2b_ref[...])
    hdn = jnp.dot(xn, w1_ref[...], preferred_element_type=jnp.float32) + b1_ref[...]
    hdn = _mish(hdn)
    ff = jnp.dot(hdn, w2_ref[...], preferred_element_type=jnp.float32) + b2_ref[...]
    # ff dropout is identity in eval mode.

    o_ref[0] = (x1 + ff).astype(o_ref.dtype)


def generative_layer(x, params, n_heads, *, tq=None, ts=None,
                     vmem_limit_bytes=64 * 1024 * 1024):
    B, S, H = x.shape
    assert H % n_heads == 0
    head_dim = H // n_heads
    inv_sqrt_d = 1.0 / float(head_dim) ** 0.5

    # Host-side fusion: fold the 1/sqrt(head_dim) scale into the Q projection
    # and concatenate Q/K/V weights into one [H, 3H] matrix (+ [1, 3H] bias).
    wqkv = jnp.concatenate(
        [params["wq"] * inv_sqrt_d, params["wk"], params["wv"]], axis=1)
    bqkv = jnp.concatenate(
        [params["bq"] * inv_sqrt_d, params["bk"], params["bv"]], axis=1)

    # Sequence tile sizes (must divide S; fall back to full S for small shapes).
    if ts is None:
        ts = 512 if (S % 512 == 0) else S
    if tq is None:
        tq = 256 if (S % 256 == 0) else S
    assert S % ts == 0 and S % tq == 0

    # ---- pass 1: LN1 + fused QKV projection ----
    qkv_weights = [params["ln1w"], params["ln1b"], wqkv, bqkv]
    qkv_wspecs = [pl.BlockSpec(p.shape, lambda b, si, nd=p.ndim: (0,) * nd)
                  for p in qkv_weights]
    q, k, v = pl.pallas_call(
        qkv_kernel,
        out_shape=tuple(jax.ShapeDtypeStruct((B, S, H), jnp.float32)
                        for _ in range(3)),
        grid=(B, S // ts),
        in_specs=[pl.BlockSpec((1, ts, H), lambda b, si: (b, si, 0))] + qkv_wspecs,
        out_specs=tuple(pl.BlockSpec((1, ts, H), lambda b, si: (b, si, 0))
                        for _ in range(3)),
        compiler_params=pltpu.CompilerParams(
            dimension_semantics=("parallel", "parallel"),
            vmem_limit_bytes=vmem_limit_bytes),
    )(x, *qkv_weights)

    # ---- pass 2: q-tiled causal attention + proj + LN2 + FFN + residuals ----
    w2_names = ["wp", "bp", "ln2w", "ln2b", "w1", "b1", "w2", "b2"]
    weights2 = [params[n] for n in w2_names]
    wspecs2 = [pl.BlockSpec(p.shape, lambda b, qi, nd=p.ndim: (0,) * nd)
               for p in weights2]
    kernel2 = functools.partial(attn_ffn_kernel, n_heads, head_dim, tq)

    return pl.pallas_call(
        kernel2,
        out_shape=jax.ShapeDtypeStruct((B, S, H), x.dtype),
        grid=(B, S // tq),
        in_specs=[pl.BlockSpec((1, tq, H), lambda b, qi: (b, qi, 0)),   # x tile
                  pl.BlockSpec((1, tq, H), lambda b, qi: (b, qi, 0)),   # q tile
                  pl.BlockSpec((1, S, H), lambda b, qi: (b, 0, 0)),     # k (full)
                  pl.BlockSpec((1, S, H), lambda b, qi: (b, 0, 0))      # v (full)
                  ] + wspecs2,
        out_specs=pl.BlockSpec((1, tq, H), lambda b, qi: (b, qi, 0)),
        compiler_params=pltpu.CompilerParams(
            dimension_semantics=("parallel", "parallel"),
            vmem_limit_bytes=vmem_limit_bytes),
    )(x, q, k, v, *weights2)


def init_params(key, hidden_size):
    H = hidden_size
    keys = jax.random.split(key, 6)
    std = 0.02
    return {
        "ln1w": jnp.ones((1, H), jnp.float32),
        "ln1b": jnp.zeros((1, H), jnp.float32),
        "wq": std * jax.random.normal(keys[0], (H, H), jnp.float32),
        "bq": jnp.zeros((1, H), jnp.float32),
        "wk": std * jax.random.normal(keys[1], (H, H), jnp.float32),
        "bk": jnp.zeros((1, H), jnp.float32),
        "wv": std * jax.random.normal(keys[2], (H, H), jnp.float32),
        "bv": jnp.zeros((1, H), jnp.float32),
        "wp": std * jax.random.normal(keys[3], (H, H), jnp.float32),
        "bp": jnp.zeros((1, H), jnp.float32),
        "ln2w": jnp.ones((1, H), jnp.float32),
        "ln2b": jnp.zeros((1, H), jnp.float32),
        "w1": std * jax.random.normal(keys[4], (H, H), jnp.float32),
        "b1": jnp.zeros((1, H), jnp.float32),
        "w2": std * jax.random.normal(keys[5], (H, H), jnp.float32),
        "b2": jnp.zeros((1, H), jnp.float32),
    }


def reference(x, params, n_heads):
    """Pure-JAX reference mirroring the PyTorch forward (eval mode)."""
    B, S, H = x.shape
    hd = H // n_heads

    def ln(v, w, b):
        mu = jnp.mean(v, axis=-1, keepdims=True)
        var = jnp.mean((v - mu) ** 2, axis=-1, keepdims=True)
        return (v - mu) / jnp.sqrt(var + 1e-5) * w + b

    residual = x
    xn = ln(x, params["ln1w"][0], params["ln1b"][0])
    q = xn @ params["wq"] + params["bq"][0]
    k = xn @ params["wk"] + params["bk"][0]
    v = xn @ params["wv"] + params["bv"][0]

    def split(t):
        return t.reshape(B, S, n_heads, hd).transpose(0, 2, 1, 3)

    q, k, v = split(q), split(k), split(v)
    s = jnp.einsum("bhqd,bhkd->bhqk", q, k) / jnp.sqrt(jnp.float32(hd))
    causal = jnp.tril(jnp.ones((S, S), bool))[None, None]
    s = jnp.where(causal, s, -10000.0)
    p = jax.nn.softmax(s, axis=-1)
    ctx = jnp.einsum("bhqk,bhkd->bhqd", p, v)
    ctx = ctx.transpose(0, 2, 1, 3).reshape(B, S, H)
    attn_out = ctx @ params["wp"] + params["bp"][0]

    x = residual + attn_out
    residual = x
    xn = ln(x, params["ln2w"][0], params["ln2b"][0])
    h = xn @ params["w1"] + params["b1"][0]
    h = h * jnp.tanh(jnp.logaddexp(h, 0.0))
    ff = h @ params["w2"] + params["b2"][0]
    return residual + ff


if __name__ == "__main__":
    B, S, H, NH = 2, 8, 32, 4
    key = jax.random.PRNGKey(0)
    kx, kp = jax.random.split(key)
    x = jax.random.normal(kx, (B, S, H), jnp.float32)
    params = init_params(kp, H)

    out = generative_layer(x, params, NH)
    out = jax.block_until_ready(out)

    ref = reference(x, params, NH)
    assert out.shape == (B, S, H)
    assert jnp.allclose(out, ref, rtol=1e-4, atol=1e-4), (
        float(jnp.max(jnp.abs(out - ref))))

    print("KERNEL_OK")
</pallas_src>

<mosaic_0001>
module attributes {stable_mosaic.version = 11 : i64} {
  func.func @qkv_kernel(%arg0: i32, %arg1: i32, %arg2: memref<1x8x32xf32, #tpu.memory_space<vmem>>, %arg3: memref<1x32xf32, #tpu.memory_space<vmem>>, %arg4: memref<1x32xf32, #tpu.memory_space<vmem>>, %arg5: memref<32x96xf32, #tpu.memory_space<vmem>>, %arg6: memref<1x96xf32, #tpu.memory_space<vmem>>, %arg7: memref<1x8x32xf32, #tpu.memory_space<vmem>>, %arg8: memref<1x8x32xf32, #tpu.memory_space<vmem>>, %arg9: memref<1x8x32xf32, #tpu.memory_space<vmem>>) attributes {dimension_semantics = [#tpu.dimension_semantics<parallel>, #tpu.dimension_semantics<parallel>], iteration_bounds = array<i64: 2, 1>, scalar_prefetch = 0 : i64, scratch_operands = 0 : i64, tpu.core_type = #tpu.core_type<tc>, window_params = [{transform_indices = @transform_0, window_bounds = array<i64: 1, 8, 32>}, {pipeline_mode = #tpu.pipeline_mode<synchronous>, transform_indices = @transform_1, window_bounds = array<i64: 1, 32>}, {pipeline_mode = #tpu.pipeline_mode<synchronous>, transform_indices = @transform_2, window_bounds = array<i64: 1, 32>}, {pipeline_mode = #tpu.pipeline_mode<synchronous>, transform_indices = @transform_3, window_bounds = array<i64: 32, 96>}, {pipeline_mode = #tpu.pipeline_mode<synchronous>, transform_indices = @transform_4, window_bounds = array<i64: 1, 96>}, {transform_indices = @transform_5, window_bounds = array<i64: 1, 8, 32>}, {transform_indices = @transform_6, window_bounds = array<i64: 1, 8, 32>}, {transform_indices = @transform_7, window_bounds = array<i64: 1, 8, 32>}]} {
    %c0 = arith.constant 0 : index
    %c0_0 = arith.constant 0 : index
    %c0_1 = arith.constant 0 : index
    %0 = vector.load %arg2[%c0, %c0_0, %c0_1] : memref<1x8x32xf32, #tpu.memory_space<vmem>>, vector<1x8x32xf32>
    %1 = vector.shape_cast %0 : vector<1x8x32xf32> to vector<8x32xf32>
    %c0_2 = arith.constant 0 : index
    %c0_3 = arith.constant 0 : index
    %2 = vector.load %arg3[%c0_2, %c0_3] : memref<1x32xf32, #tpu.memory_space<vmem>>, vector<1x32xf32>
    %c0_4 = arith.constant 0 : index
    %c0_5 = arith.constant 0 : index
    %3 = vector.load %arg4[%c0_4, %c0_5] : memref<1x32xf32, #tpu.memory_space<vmem>>, vector<1x32xf32>
    %cst = arith.constant dense<0.000000e+00> : vector<8xf32>
    %4 = vector.multi_reduction <add>, %1, %cst [1] : vector<8x32xf32> to vector<8xf32>
    %5 = vector.shape_cast %4 : vector<8xf32> to vector<8x1xf32>
    %cst_6 = arith.constant 3.200000e+01 : f32
    %6 = vector.broadcast %cst_6 : f32 to vector<8x1xf32>
    %7 = arith.divf %5, %6 : vector<8x1xf32>
    %8 = vector.broadcast %7 : vector<8x1xf32> to vector<8x32xf32>
    %9 = arith.subf %1, %8 : vector<8x32xf32>
    %10 = arith.mulf %9, %9 : vector<8x32xf32>
    %cst_7 = arith.constant dense<0.000000e+00> : vector<8xf32>
    %11 = vector.multi_reduction <add>, %10, %cst_7 [1] : vector<8x32xf32> to vector<8xf32>
    %12 = vector.shape_cast %11 : vector<8xf32> to vector<8x1xf32>
    %cst_8 = arith.constant 3.200000e+01 : f32
    %13 = vector.broadcast %cst_8 : f32 to vector<8x1xf32>
    %14 = arith.divf %12, %13 : vector<8x1xf32>
    %15 = vector.broadcast %7 : vector<8x1xf32> to vector<8x32xf32>
    %16 = arith.subf %1, %15 : vector<8x32xf32>
    %cst_9 = arith.constant 9.99999974E-6 : f32
    %17 = vector.broadcast %cst_9 : f32 to vector<8x1xf32>
    %18 = arith.addf %14, %17 : vector<8x1xf32>
    %19 = math.rsqrt %18 : vector<8x1xf32>
    %20 = vector.broadcast %19 : vector<8x1xf32> to vector<8x32xf32>
    %21 = arith.mulf %16, %20 : vector<8x32xf32>
    %22 = vector.broadcast %2 : vector<1x32xf32> to vector<8x32xf32>
    %23 = arith.mulf %21, %22 : vector<8x32xf32>
    %24 = vector.broadcast %3 : vector<1x32xf32> to vector<8x32xf32>
    %25 = arith.addf %23, %24 : vector<8x32xf32>
    %c0_10 = arith.constant 0 : index
    %c0_11 = arith.constant 0 : index
    %26 = vector.load %arg5[%c0_10, %c0_11] : memref<32x96xf32, #tpu.memory_space<vmem>>, vector<32x96xf32>
    %cst_12 = arith.constant dense<0.000000e+00> : vector<8x96xf32>
    %27 = tpu.matmul %25, %26, %cst_12 {dimension_numbers = #tpu.dot_dimension_numbers<[1], [0], [0], [1], [0, 0, 1, 1], [], []>} : vector<8x32xf32>, vector<32x96xf32>, vector<8x96xf32> -> vector<8x96xf32>
    %c0_13 = arith.constant 0 : index
    %c0_14 = arith.constant 0 : index
    %28 = vector.load %arg6[%c0_13, %c0_14] : memref<1x96xf32, #tpu.memory_space<vmem>>, vector<1x96xf32>
    %29 = vector.broadcast %28 : vector<1x96xf32> to vector<8x96xf32>
    %30 = arith.addf %27, %29 : vector<8x96xf32>
    %31 = vector.extract_strided_slice %30 {offsets = [0, 0], sizes = [8, 32], strides = [1, 1]} : vector<8x96xf32> to vector<8x32xf32>
    %c0_15 = arith.constant 0 : index
    %c0_16 = arith.constant 0 : index
    %c0_17 = arith.constant 0 : index
    %32 = vector.load %arg7[%c0_15, %c0_16, %c0_17] : memref<1x8x32xf32, #tpu.memory_space<vmem>>, vector<1x8x32xf32>
    %33 = vector.shape_cast %32 : vector<1x8x32xf32> to vector<8x32xf32>
    %34 = vector.shape_cast %31 : vector<8x32xf32> to vector<1x8x32xf32>
    tpu.vector_store %arg7[%c0_15, %c0_16, %c0_17], %34 {strides = array<i32>} : memref<1x8x32xf32, #tpu.memory_space<vmem>>, vector<1x8x32xf32>,
    %35 = vector.extract_strided_slice %30 {offsets = [0, 32], sizes = [8, 32], strides = [1, 1]} : vector<8x96xf32> to vector<8x32xf32>
    %c0_18 = arith.constant 0 : index
    %c0_19 = arith.constant 0 : index
    %c0_20 = arith.constant 0 : index
    %36 = vector.load %arg8[%c0_18, %c0_19, %c0_20] : memref<1x8x32xf32, #tpu.memory_space<vmem>>, vector<1x8x32xf32>
    %37 = vector.shape_cast %36 : vector<1x8x32xf32> to vector<8x32xf32>
    %38 = vector.shape_cast %35 : vector<8x32xf32> to vector<1x8x32xf32>
    tpu.vector_store %arg8[%c0_18, %c0_19, %c0_20], %38 {strides = array<i32>} : memref<1x8x32xf32, #tpu.memory_space<vmem>>, vector<1x8x32xf32>,
    %39 = vector.extract_strided_slice %30 {offsets = [0, 64], sizes = [8, 32], strides = [1, 1]} : vector<8x96xf32> to vector<8x32xf32>
    %c0_21 = arith.constant 0 : index
    %c0_22 = arith.constant 0 : index
    %c0_23 = arith.constant 0 : index
    %40 = vector.load %arg9[%c0_21, %c0_22, %c0_23] : memref<1x8x32xf32, #tpu.memory_space<vmem>>, vector<1x8x32xf32>
    %41 = vector.shape_cast %40 : vector<1x8x32xf32> to vector<8x32xf32>
    %42 = vector.shape_cast %39 : vector<8x32xf32> to vector<1x8x32xf32>
    tpu.vector_store %arg9[%c0_21, %c0_22, %c0_23], %42 {strides = array<i32>} : memref<1x8x32xf32, #tpu.memory_space<vmem>>, vector<1x8x32xf32>,
    return
  }
  func.func @transform_0(%arg0: i32, %arg1: i32) -> (i32, i32, i32) {
    %c0_i32 = arith.constant 0 : i32
    %c0_i32_0 = arith.constant 0 : i32
    return %arg0, %arg1, %c0_i32 : i32, i32, i32
  }
  func.func @transform_1(%arg0: i32, %arg1: i32) -> (i32, i32) {
    %c0_i32 = arith.constant 0 : i32
    %c0_i32_0 = arith.constant 0 : i32
    %c0_i32_1 = arith.constant 0 : i32
    return %c0_i32, %c0_i32_0 : i32, i32
  }
  func.func @transform_2(%arg0: i32, %arg1: i32) -> (i32, i32) {
    %c0_i32 = arith.constant 0 : i32
    %c0_i32_0 = arith.constant 0 : i32
    %c0_i32_1 = arith.constant 0 : i32
    return %c0_i32, %c0_i32_0 : i32, i32
  }
  func.func @transform_3(%arg0: i32, %arg1: i32) -> (i32, i32) {
    %c0_i32 = arith.constant 0 : i32
    %c0_i32_0 = arith.constant 0 : i32
    %c0_i32_1 = arith.constant 0 : i32
    return %c0_i32, %c0_i32_0 : i32, i32
  }
  func.func @transform_4(%arg0: i32, %arg1: i32) -> (i32, i32) {
    %c0_i32 = arith.constant 0 : i32
    %c0_i32_0 = arith.constant 0 : i32
    %c0_i32_1 = arith.constant 0 : i32
    return %c0_i32, %c0_i32_0 : i32, i32
  }
  func.func @transform_5(%arg0: i32, %arg1: i32) -> (i32, i32, i32) {
    %c0_i32 = arith.constant 0 : i32
    %c0_i32_0 = arith.constant 0 : i32
    return %arg0, %arg1, %c0_i32 : i32, i32, i32
  }
  func.func @transform_6(%arg0: i32, %arg1: i32) -> (i32, i32, i32) {
    %c0_i32 = arith.constant 0 : i32
    %c0_i32_0 = arith.constant 0 : i32
    return %arg0, %arg1, %c0_i32 : i32, i32, i32
  }
  func.func @transform_7(%arg0: i32, %arg1: i32) -> (i32, i32, i32) {
    %c0_i32 = arith.constant 0 : i32
    %c0_i32_0 = arith.constant 0 : i32
    return %arg0, %arg1, %c0_i32 : i32, i32, i32
  }
}

</mosaic_0001>

<bundles_post_ra>
// kernel: tpu_custom_call.1
= control target key start
LH: loop header
LB: loop body
LE: loop exit
PB: predicated region body
PF: predicated region fallthrough
CT: control target
= control target key end

     0   :  { %s1642_s0 = inlined_call_operand.hbm [shape: f32[2,8,32], index: 0, kind: input, shape index: {}]   ;;  %s1643_s1 = inlined_call_operand.hbm [shape: f32[1,32], index: 1, kind: input, shape index: {}]   ;;  %s1644_s2 = inlined_call_operand.hbm [shape: f32[1,32], index: 2, kind: input, shape index: {}]   ;;  %s1645_s3 = inlined_call_operand.hbm [shape: f32[32,96], index: 3, kind: input, shape index: {}]   ;;  %s1646_s4 = inlined_call_operand.hbm [shape: f32[1,96], index: 4, kind: input, shape index: {}]   ;;  %s1647_s5 = inlined_call_operand.hbm [shape: f32[2,8,32], index: 5, kind: output, shape index: {0}]   ;;  %s1648_s6 = inlined_call_operand.hbm [shape: f32[2,8,32], index: 6, kind: output, shape index: {1}]   ;;  %s1649_s7 = inlined_call_operand.hbm [shape: f32[2,8,32], index: 7, kind: output, shape index: {2}]  }
   0x1   :  { %1654 = sst [smem:[#allocation20_spill]] %s1643_s1 }
   0x2   :  { %1655 = sst [smem:[#allocation21_spill]] %s1644_s2 }
   0x3   :  { %13 = vsyncpa [#allocation3], 0 }
   0x4   :  { %15 = vsyncpa [#allocation3 + $0x1], 0 }
   0x5   :  { %16 = vsyncpa [#allocation6], 0 }
   0x6   :  { %17 = vsyncpa [#allocation9], 0 }
   0x7   :  { %18 = vsyncpa [#allocation4], 0 }
   0x8   :  { %20 = vsyncpa [#allocation4 + $0x1], 0 }
   0x9   :  { %21 = vsyncpa [#allocation13], 0 }
   0xa   :  { %23 = vsyncpa [#allocation13 + $0x1], 0  ;;  %s1269_s24 = smov 0   ;;  %s1271_s25 = smov 0  }
   0xb   :  { %s1273_s26 = smov 0   ;;  %s1275_s27 = smov 0  }
   0xc   :  { %s1277_s28 = smov 0   ;;  %s1279_s29 = smov 0  }
   0xd LB: > { %s1300_s30 = sadd.s32 4294967295, %s1212_s29   ;;  %p747_p0 = scmp.ge.s32.totalorder %s1212_s29, 1  ;;  %s1212_s29 = sphi %s1279_s29, %s29_s29   ;;  %s1208_s28 = sphi %s1277_s28, %s1680_s28   ;;  %s1204_s27 = sphi %s1275_s27, %s1679_s27   ;;  %s1200_s26 = sphi %s1273_s26, %s1678_s26   ;;  %s1196_s25 = sphi %s1271_s25, %s1677_s25   ;;  %s1192_s24 = sphi %s1269_s24, %s1676_s24  }
   0xe   : > { %p1650_p1 = scmp.eq.s32.totalorder %s1300_s30, 0  ;;  %p242_p2 = scmp.lt.s32.totalorder %s1212_s29, 3 }
   0xf   : > { %s1214_s9 = smov [#allocation5]   ;;  %s1215_s11 = smov [#allocation8]  }
  0x10   : > { %p1305_p3 = pnand %p747_p0, %p242_p2  ;;  %s255_s10 = sshll.u32 %s1214_s9, 4  ;;  %s256_s10 = int_to_ptr.vmem [resolvable:$true] %s255_s10 }
  0x11   : > { %s276_s12 = sshll.u32 %s1215_s11, 4  ;;  %s1216_s14 = smov [#allocation7]   ;;  %s1318_s12 = int_to_ptr.vmem [resolvable:$true] %s276_s12 }
  0x12   : > { %s1656_s8 = scalar_select %p1305_p3, 1, 0 }
  0x13   : > { %p822_p5 = pneg %p1305_p3  ;;  %s1320_s15 = sshll.u32 %s1216_s14, 4  ;;  %s267_s15 = int_to_ptr.vmem [resolvable:$true] %s1320_s15 }
  0x14   : > { %s1658_s1 = sld [smem:[#allocation20_spill]] }
  0x15   : > { %p1314_p6 = pnand %p822_p5, %p1650_p1 }
  0x17   : > { %p1330_p8 = pneg %p1314_p6 }
  0x1a   : > { %s920_s18 = scalar_lea.hbm %s1658_s1, 16 }
  0x1b   : > { %p921_p7 = scmp.ne.s32.totalorder %s1658_s1, %s920_s18  ;;  %p927_p11 = scmp.lt.u32.totalorder %s920_s18, %s1658_s1 }
  0x1d   : > { %p923_p9 = pnand %p1330_p8, %p921_p7 }
  0x1f   : > { %p924_p10 = pneg %p923_p9 }
  0x21   : > { %p929_p12 = pnand %p927_p11, %p924_p10 }
  0x23   : > { %932 = shalt.err (!%p929_p12)
}
  0x24   : > { %s933_s9 = scalar_lea.vmem %s256_s10, 16  ;;  %s940_s11 = scalar_lea.vmem %s256_s10, 32 }
  0x25   : > { %p934_p13 = scmp.ne.s32.totalorder %s256_s10, %s933_s9  ;;  %p941_p5 = scmp.lt.s32.totalorder %s256_s10, %s256_s10 }
  0x26   : > { %p942_p4 = scmp.lt.s32.totalorder %s940_s11, %s933_s9 }
  0x27   : > { %p936_p0 = pnand %p934_p13, %p1330_p8 }
  0x28   : > { %p943_p1 = por %p942_p4, %p941_p5 }
  0x29   : > { %p937_p2 = pneg %p936_p0 }
  0x2b   : > { %p944_p3 = pnand %p943_p1, %p937_p2 }
  0x2d   : > { %947 = shalt.err (!%p944_p3)
}
  0x2e   : > { %825 = dma.hbm_to_vmem [thread:$0]  (!%p1314_p6), %s1658_s1, 16, %s256_s10, [#allocation6]  }
  0x2f   : > { %s948_s19 = scalar_lea.hbm %s1645_s3, 512 }
  0x30   : > { %p949_p7 = scmp.ne.s32.totalorder %s1645_s3, %s948_s19  ;;  %p955_p1 = scmp.lt.u32.totalorder %s948_s19, %s1645_s3 }
  0x32   : > { %p951_p9 = pnand %p949_p7, %p1330_p8 }
  0x34   : > { %p952_p4 = pneg %p951_p9 }
  0x36   : > { %p957_p3 = pnand %p955_p1, %p952_p4 }
  0x38   : > { %960 = shalt.err (!%p957_p3)
}
  0x39   : > { %s961_s10 = scalar_lea.vmem %s1318_s12, 512  ;;  %p969_p13 = scmp.lt.s32.totalorder %s1318_s12, %s1318_s12 }
  0x3a   : > { %p962_p10 = scmp.ne.s32.totalorder %s1318_s12, %s961_s10  ;;  %p970_p0 = scmp.lt.s32.totalorder %s961_s10, %s961_s10 }
  0x3c   : > { %p964_p11 = pnand %p962_p10, %p1330_p8  ;;  %p971_p2 = por %p970_p0, %p969_p13 }
  0x3e   : > { %p965_p12 = pneg %p964_p11 }
  0x40   : > { %p972_p5 = pnand %p971_p2, %p965_p12 }
  0x42   : > { %975 = shalt.err (!%p972_p5)
}
  0x43   : > { %s1217_s11 = smov 128   ;;  %s1218_s14 = smov 8  }
  0x44   : > { %831 = dma.hbm_to_vmem [thread:$0]  (!%p1314_p6), %s1645_s3, 512, %s1318_s12, [#allocation9], %s1217_s11, %s1217_s11, %s1218_s14  }
  0x45   : > { %s1660_s2 = sld [smem:[#allocation21_spill]] }
  0x4b   : > { %s976_s20 = scalar_lea.hbm %s1660_s2, 16 }
  0x4c   : > { %p977_p7 = scmp.ne.s32.totalorder %s1660_s2, %s976_s20  ;;  %p983_p1 = scmp.lt.u32.totalorder %s976_s20, %s1660_s2 }
  0x4e   : > { %p979_p9 = pnand %p977_p7, %p1330_p8 }
  0x50   : > { %p980_p4 = pneg %p979_p9 }
  0x52   : > { %p985_p3 = pnand %p983_p1, %p980_p4 }
  0x54   : > { %988 = shalt.err (!%p985_p3)
}
  0x55   : > { %s989_s16 = scalar_lea.vmem %s267_s15, 16  ;;  %s996_s12 = scalar_lea.vmem %s267_s15, 32 }
  0x56   : > { %p990_p10 = scmp.ne.s32.totalorder %s267_s15, %s989_s16  ;;  %p997_p13 = scmp.lt.s32.totalorder %s267_s15, %s267_s15 }
  0x57   : > { %p998_p0 = scmp.lt.s32.totalorder %s996_s12, %s989_s16 }
  0x58   : > { %p992_p11 = pnand %p990_p10, %p1330_p8 }
  0x59   : > { %p999_p2 = por %p998_p0, %p997_p13 }
  0x5a   : > { %p993_p12 = pneg %p992_p11 }
  0x5c   : > { %p1000_p5 = pnand %p999_p2, %p993_p12 }
  0x5e   : > { %1003 = shalt.err (!%p1000_p5)
}
  0x5f   : > { %828 = dma.hbm_to_vmem [thread:$0]  (!%p1314_p6), %s1660_s2, 16, %s267_s15, [#allocation6]  }
  0x60   : > { %s1219_s17 = smov [#allocation10]   ;;  %s1004_s22 = scalar_lea.hbm %s1646_s4, 16 }
  0x61   : > { %s290_s18 = sshll.u32 %s1219_s17, 4  ;;  %p1005_p7 = scmp.ne.s32.totalorder %s1646_s4, %s1004_s22  ;;  %s291_s18 = int_to_ptr.vmem [resolvable:$true] %s290_s18 }
  0x62   : > { %p1011_p1 = scmp.lt.u32.totalorder %s1004_s22, %s1646_s4 }
  0x63   : > { %p1007_p9 = pnand %p1005_p7, %p1330_p8 }
  0x65   : > { %p1008_p4 = pneg %p1007_p9 }
  0x67   : > { %p1013_p3 = pnand %p1011_p1, %p1008_p4 }
  0x69   : > { %1016 = shalt.err (!%p1013_p3)
}
  0x6a   : > { %s1017_s15 = scalar_lea.vmem %s291_s18, 16  ;;  %s1024_s12 = scalar_lea.vmem %s291_s18, 32 }
  0x6b   : > { %p1018_p10 = scmp.ne.s32.totalorder %s291_s18, %s1017_s15  ;;  %p1025_p13 = scmp.lt.s32.totalorder %s291_s18, %s291_s18 }
  0x6c   : > { %p1026_p0 = scmp.lt.s32.totalorder %s1024_s12, %s1017_s15 }
  0x6d   : > { %p1020_p11 = pnand %p1018_p10, %p1330_p8 }
  0x6e   : > { %p1027_p2 = por %p1026_p0, %p1025_p13 }
  0x6f   : > { %p1021_p12 = pneg %p1020_p11 }
  0x71   : > { %p1028_p5 = pnand %p1027_p2, %p1021_p12 }
  0x73   : > { %1031 = shalt.err (!%p1028_p5)
}
  0x74   : > { %834 = dma.hbm_to_vmem [thread:$0]  (!%p1314_p6), %s1646_s4, 16, %s291_s18, [#allocation9]  }
  0x75   : > { %s1652_s21 = sadd.s32 4294967294, %s1212_s29   ;;  %s41_s17 = sadd.s32 1, %s1208_s28 }
  0x76   : > { %p43_p8 = scmp.ge.s32.totalorder %s41_s17, 2  ;;  %s50_s13 = sadd.s32 1, %s1200_s26 }
  0x77   : > { %p57_p7 = scmp.ne.s32.totalorder %s1200_s26, %s1196_s25  ;;  %p58_p9 = scmp.eq.s32.totalorder %s1212_s29, 0 }
  0x78   : > { %s1682_s17 = smov (%p43_p8, %s41_s17), 0  ;;  %p63_p1 = scmp.ne.s32.totalorder %s1196_s25, %s1192_s24 }
  0x79   : > { %p1414_p4 = por %p58_p9, %p57_p7  ;;  %s45_s18 = ssub.s32 %s1208_s28, %s1682_s17 }
  0x7a   : > { %p173_p6 = scmp.eq.s32.totalorder %s1300_s30, 1  ;;  %p48_p3 = scmp.eq.s32.totalorder %s45_s18, 0 }
  0x7b   : > { %p1662_p10 = scmp.eq.s32.totalorder %s1300_s30, 0  ;;  %p179_p13 = scmp.eq.s32.totalorder %s1652_s21, 1 }
  0x7c   : > { %p1429_p12 = por %p173_p6, %p57_p7  ;;  %p853_p2 = scmp.lt.s32.totalorder %s1212_s29, 2 }
  0x7d   : > { %p1425_p11 = por %p1662_p10, %p63_p1  ;;  %p1438_p0 = por %p179_p13, %p63_p1 }
  0x7e   : > { %s1664_s22 = scalar_select %p1429_p12, 1, 0 }
  0x7f   : > { %s1436_s23 = scalar_select %p48_p3, %s1200_s26, %s50_s13  }
  0x80   : > { %s1665_s9 = scalar_select %p1438_p0, 1, 0 }
  0x81   : > { %s301_s10 = sand.u32 1, %s1200_s26   ;;  %s754_s16 = sshll.u32 %s1208_s28, 7 }
  0x82   : > { %s753_s15 = sshll.u32 %s301_s10, 3  ;;  %s1448_s14 = scalar_lea.hbm %s1642_s0, %s754_s16 }
  0x83   : > { %s305_s18 = scalar_lea.vmem [#allocation2], %s753_s15  ;;  %p1452_p5 = pnand %p853_p2, %p1414_p4 }
  0x84   : > { %s313_s13 = sshll.u32 %s305_s18, 4  ;;  %s302_s1 = scalar_lea.sflag [#allocation3], %s301_s10  ;;  %s1456_s13 = int_to_ptr.vmem [resolvable:$true] %s313_s13 }
  0x85   : > { %s1032_s2 = scalar_lea.hbm %s1448_s14, 128  ;;  %p1034_p7 = pneg %p1452_p5 }
  0x86   : > { %p1033_p8 = scmp.ne.s32.totalorder %s1448_s14, %s1032_s2  ;;  %s1037_s19 = scalar_lea.hbm %s1642_s0, 256 }
  0x87   : > { %p1038_p4 = scmp.lt.u32.totalorder %s1448_s14, %s1642_s0  ;;  %p1039_p6 = scmp.lt.u32.totalorder %s1037_s19, %s1032_s2 }
  0x88   : > { %p1035_p9 = pnand %p1034_p7, %p1033_p8  ;;  %p1041_p10 = scmp.lt.u32.totalorder %s1032_s2, %s1448_s14 }
  0x89   : > { %p1040_p3 = por %p1039_p6, %p1038_p4 }
  0x8a   : > { %p1036_p1 = pneg %p1035_p9 }
  0x8b   : > { %p1042_p13 = por %p1041_p10, %p1040_p3 }
  0x8d   : > { %p1043_p2 = pnand %p1042_p13, %p1036_p1 }
  0x8f   : > { %1046 = shalt.err (!%p1043_p2)
}
  0x90   : > { %s1047_s10 = scalar_lea.vmem %s1456_s13, 128  ;;  %s1220_s18 = smov [#allocation2]  }
  0x91   : > { %p1048_p8 = scmp.ne.s32.totalorder %s1456_s13, %s1047_s10  ;;  %s1052_s16 = sshll.u32 %s1220_s18, 4  ;;  %s1053_s16 = int_to_ptr.vmem [resolvable:$false] %s1052_s16 }
  0x92   : > { %s1054_s15 = scalar_lea.vmem %s1053_s16, 256  ;;  %p1055_p12 = scmp.lt.s32.totalorder %s1456_s13, %s1053_s16 }
  0x93   : > { %p1050_p9 = pnand %p1048_p8, %p1034_p7  ;;  %p1056_p4 = scmp.lt.s32.totalorder %s1054_s15, %s1047_s10 }
  0x95   : > { %p1051_p0 = pneg %p1050_p9  ;;  %p1057_p6 = por %p1056_p4, %p1055_p12 }
  0x97   : > { %p1058_p3 = pnand %p1057_p6, %p1051_p0 }
  0x99   : > { %1061 = shalt.err (!%p1058_p3)
}
  0x9a   : > { %838 = dma.hbm_to_vmem [thread:$0]  (!%p1452_p5), %s1448_s14, 128, %s1456_s13, %s302_s1  }
  0x9b   : > { %p1667_p1 = scmp.ne.s32.totalorder %s1656_s8, 0 }
  0x9c   : > { %s1486_s2 = sand.u32 (!%p1667_p1), 1, %s1196_s25  }
  0x9d   : > { %322 = sbr.rel (%p1667_p1) target bundleno = 852 (0x354), region = 40  ;;  %s1489_s19 = sshll.u32 (!%p1667_p1), %s1486_s2, 3 }
  0x9e   : > { %s325_s12 = scalar_lea.sflag (!%p1667_p1), [#allocation3], %s1486_s2  ;;  %s328_s11 = scalar_lea.vmem (!%p1667_p1), [#allocation2], %s1489_s19 }
  0xa4   : > { %1171 = dma.done.wait (%p1425_p11), %s325_s12, 128  }
  0xa5   : > { %1173 = vsyncadd (%p1425_p11), %s325_s12, 4294967168  ;;  %p1668_p12 = scmp.eq.s32.totalorder %s1300_s30, 0 }
  0xa7   : > { %1175 = dma.done.wait (%p1668_p12), [#allocation6], 32   ;;  %p1669_p0 = pmov %p1668_p12 }
  0xa9   : > { %1177 = vsyncadd (%p1669_p0), [#allocation6], 4294967264  ;;  %p1670_p5 = pmov %p1669_p0 }
  0xaa   : > { %p1671_p7 = pmov %p1669_p0 }
  0xab   : > { %1179 = dma.done.wait (%p1670_p5), [#allocation9], 528  }
  0xac   : > { %1181 = vsyncadd (%p1671_p7), [#allocation9], 4294966768  ;;  %vm388_vm0 = vcmask 261120   ;;  %v385_v0 = vld [vmem:[%s328_s11] sm:$0xff]  ;;  %v417_v7 = vld [vmem:[#allocation8] sm:$0xff]  ;;  %v1221_v10 = vmov 0.0|0.0  }
  0xad   : > { %v389_v1 = vsel %vm388_vm0, %v385_v0, 0.0  ;;  %v418_v8 = vld [vmem:[#allocation8 + $0x8] sm:$0xff]  ;;  %v419_v9 = vld [vmem:[#allocation8 + $0x10] sm:$0xff]  ;;  %792 = vmatprep.subr.bf16.mxu0 %v1221_v10  ;;  %v420_v12 = vld [vmem:[#allocation8 + $0x18] sm:$0xff]  ;;  %vm1222_vm1 = vmmov 0   ;;  %v1223_v13 = vmov 0.0  }
  0xae   : > { %390 = vadd.xlane.f32.xlu0 %v389_v1  ;;  %v793_v11 = vpack.c.bf16 %v418_v8, %v417_v7  ;;  %789 = vmatprep.mubr.msk.f32.mxu0 %vm1222_vm1, %v1223_v13  ;;  %v796_v14 = vpack.c.bf16 %v420_v12, %v419_v9  ;;  %v764_v19 = vld [vmem:[#allocation5] ss:$0 sm:$0xff]  ;;  %v765_v21 = vld [vmem:[#allocation7] ss:$0 sm:$0xff]  ;;  %v766_v24 = vld [vmem:[#allocation10] ss:$0 sm:$0xff] }
  0xaf   : > { %s1509_s1 = sshll.u32 %s1204_s27, 7  ;;  %s370_s8 = scalar_lea.vmem [#allocation11], %s1489_s19 }
  0xb0   : > { %794 = vmatpush3.bf16.msra.mxu0 %v793_v11  ;;  %s536_s21 = sshll.u32 %s370_s8, 4  ;;  %s1516_s13 = scalar_lea.hbm %s1647_s5, %s1509_s1  ;;  %s1518_s21 = int_to_ptr.vmem [resolvable:$true] %s536_s21 }
  0xb1   : > { %795 = vmatprep.subr.bf16.mxu0 %v1221_v10  ;;  %s1224_s10 = smov 96   ;;  %s512_s27 = scalar_lea.sflag [#allocation4], %s1486_s2 }
  0xb2   : > { %s1062_s18 = scalar_lea.vmem %s1518_s21, 128  ;;  %p1672_p10 = scmp.ne.s32.totalorder %s1664_s22, 0 }
  0xb3   : > { %p1063_p11 = scmp.ne.s32.totalorder %s1518_s21, %s1062_s18  ;;  %s1225_s16 = smov [#allocation11]  }
  0xb4   : > { %797 = vmatpush3.bf16.msra.mxu0 %v796_v14  ;;  %s1066_s15 = sshll.u32 %s1225_s16, 4  ;;  %s1067_s15 = int_to_ptr.vmem [resolvable:$false] %s1066_s15 }
  0xb5   : > { %p1064_p13 = pnand %p1063_p11, %p1672_p10  ;;  %s1068_s12 = scalar_lea.vmem %s1067_s15, 256 }
  0xb6   : > { %p1069_p8 = scmp.lt.s32.totalorder %s1518_s21, %s1067_s15  ;;  %p1070_p9 = scmp.lt.s32.totalorder %s1068_s12, %s1062_s18 }
  0xb7   : > { %p1065_p2 = pneg %p1064_p13 }
  0xb8   : > { %p1071_p4 = por %p1070_p9, %p1069_p8 }
  0xba   : > { %p1072_p6 = pnand %p1071_p4, %p1065_p2 }
 0x13b   : > { %v391_v2 = vpop.xlane.xlu0 %390 }
 0x13c   : > { %v393_v3 = vmul.f32 0.03125, %v391_v2 }
 0x13e   : > { %v394_v4 = vsub.f32 %v385_v0, %v393_v3 }
 0x140   : > { %v395_v5 = vmul.f32 %v394_v4, %v394_v4 }
 0x142   : > { %v396_v6 = vsel %vm388_vm0, %v395_v5, 0.0 }
 0x143   : > { %397 = vadd.xlane.f32.xlu0 %v396_v6 }
 0x1d0   : > { %v398_v15 = vpop.xlane.xlu0 %397 }
 0x1d1   : > { %v399_v16 = vmul.f32 0.03125, %v398_v15 }
 0x1d3   : > { %v400_v17 = vadd.f32 1e-05, %v399_v16 }
 0x1d5   : > { %918 = vrsqrt.f32 %v400_v17 }
 0x1df   : > { %v919_v18 = vpop.eup %918 }
 0x1e0   : > { %v402_v20 = vmul.f32 %v919_v18, %v394_v4 }
 0x1e2   : > { %v409_v22 = vmul.f32 %v764_v19, %v402_v20 }
 0x1e4   : > { %v416_v23 = vadd.f32 %v765_v21, %v409_v22 }
 0x1e6   : > { %790 = vmatmul.mubr.msk.f32.vlgmr.msra.gmra.mrb[0].mxu0 %vm388_vm0, %v416_v23 }
 0x2b9   : > { %v497_v25 = vpop.f32.mrb[0].mxu0 }
 0x2ba   : > { %v498_v26 = vadd.f32 %v766_v24, %v497_v25  ;;  %v791_v27 = vpop.f32.mrb[1].mxu0 }
 0x2bc   : > { %503 = vrot.lane.b32.xlu1 %v498_v26, %s1224_s10  ;;  %501 = vst.msk [vmem:[%s370_s8] sm:$0xff] %vm388_vm0, %v498_v26 }
 0x2bd   : > { %1075 = shalt.err (!%p1072_p6)
}
 0x2be   : > { %s1076_s2 = scalar_lea.hbm %s1516_s13, 128  ;;  %s1080_s20 = scalar_lea.hbm %s1647_s5, 256 }
 0x2bf   : > { %p1077_p3 = scmp.ne.s32.totalorder %s1516_s13, %s1076_s2  ;;  %p1081_p0 = scmp.lt.u32.totalorder %s1516_s13, %s1647_s5 }
 0x2c0   : > { %p1082_p5 = scmp.lt.u32.totalorder %s1080_s20, %s1076_s2  ;;  %p1084_p11 = scmp.lt.u32.totalorder %s1076_s2, %s1516_s13 }
 0x2c1   : > { %p1078_p1 = pnand %p1077_p3, %p1672_p10 }
 0x2c2   : > { %p1083_p7 = por %p1082_p5, %p1081_p0 }
 0x2c3   : > { %p1079_p12 = pneg %p1078_p1 }
 0x2c4   : > { %p1085_p13 = por %p1084_p11, %p1083_p7 }
 0x2c6   : > { %p1086_p2 = pnand %p1085_p13, %p1079_p12 }
 0x2c8   : > { %1089 = shalt.err (!%p1086_p2)
}
 0x2c9   : > { %816 = dma.vmem_to_hbm [thread:$0]  (%p1672_p10), %s1518_s21, 128, %s1516_s13, %s512_s27  }
 0x2ca   : > { %s1226_s18 = smov 64   ;;  %s516_s16 = sand.u32 1, %s1300_s30  }
 0x2cb   : > { %507 = vrot.lane.b32.xlu1 %v498_v26, %s1226_s18  ;;  %s377_s15 = scalar_lea.vmem [#allocation12], %s1489_s19  ;;  %s1549_s8 = scalar_lea.hbm %s1648_s6, %s1509_s1 }
 0x2cc   : > { %s550_s12 = sshll.u32 %s377_s15, 4  ;;  %s384_s20 = scalar_lea.vmem [#allocation14], %s1489_s19  ;;  %s1551_s12 = int_to_ptr.vmem [resolvable:$true] %s550_s12 }
 0x2cd   : > { %s1556_s14 = sshll.u32 %s384_s20, 4  ;;  %s1559_s30 = scalar_lea.sflag [#allocation13], %s516_s16  ;;  %s1590_s14 = int_to_ptr.vmem [resolvable:$true] %s1556_s14 }
 0x2ce   : > { %s1090_s21 = scalar_lea.vmem %s1551_s12, 128  ;;  %s1227_s13 = smov [#allocation12]  }
 0x2cf   : > { %p1091_p8 = scmp.ne.s32.totalorder %s1551_s12, %s1090_s21  ;;  %s1094_s27 = sshll.u32 %s1227_s13, 4  ;;  %s1095_s27 = int_to_ptr.vmem [resolvable:$false] %s1094_s27 }
 0x2d0   : > { %s1096_s10 = scalar_lea.vmem %s1095_s27, 256  ;;  %p1097_p6 = scmp.lt.s32.totalorder %s1551_s12, %s1095_s27 }
 0x2d1   : > { %p1092_p9 = pnand %p1091_p8, %p1672_p10  ;;  %p1098_p3 = scmp.lt.s32.totalorder %s1096_s10, %s1090_s21 }
 0x2d3   : > { %p1093_p4 = pneg %p1092_p9  ;;  %p1099_p1 = por %p1098_p3, %p1097_p6 }
 0x2d5   : > { %p1100_p12 = pnand %p1099_p1, %p1093_p4 }
 0x32e   : > { %v504_v28 = vpop.permute.xlu1 %503 }
 0x32f   : > { %506 = vst.msk [vmem:[%s377_s15] sm:$0xff] %vm388_vm0, %v504_v28 }
 0x330   : > { %1103 = shalt.err (!%p1100_p12)
}
 0x331   : > { %s1104_s18 = scalar_lea.hbm %s1549_s8, 128  ;;  %s1108_s2 = scalar_lea.hbm %s1648_s6, 256 }
 0x332   : > { %p1105_p0 = scmp.ne.s32.totalorder %s1549_s8, %s1104_s18  ;;  %p1109_p11 = scmp.lt.u32.totalorder %s1549_s8, %s1648_s6 }
 0x333   : > { %p1110_p13 = scmp.lt.u32.totalorder %s1108_s2, %s1104_s18  ;;  %p1112_p8 = scmp.lt.u32.totalorder %s1104_s18, %s1549_s8 }
 0x334   : > { %p1106_p5 = pnand %p1105_p0, %p1672_p10 }
 0x335   : > { %p1111_p2 = por %p1110_p13, %p1109_p11 }
 0x336   : > { %p1107_p7 = pneg %p1106_p5 }
 0x337   : > { %p1113_p9 = por %p1112_p8, %p1111_p2 }
 0x339   : > { %p1114_p4 = pnand %p1113_p9, %p1107_p7 }
 0x33b   : > { %1117 = shalt.err (!%p1114_p4)
}
 0x33c   : > { %817 = dma.vmem_to_hbm [thread:$0]  (%p1672_p10), %s1551_s12, 128, %s1549_s8, %s1559_s30  }
 0x33d   : > { %s1587_s10 = scalar_lea.hbm %s1649_s7, %s1509_s1  ;;  %v508_v29 = vpop.permute.xlu1 %507  ;;  %s1118_s18 = scalar_lea.vmem %s1590_s14, 128 }
 0x33e   : > { %510 = vst.msk [vmem:[%s384_s20] sm:$0xff] %vm388_vm0, %v508_v29  ;;  %p1119_p6 = scmp.ne.s32.totalorder %s1590_s14, %s1118_s18  ;;  %s1228_s12 = smov [#allocation14]  }
 0x33f   : > { %s1122_s8 = sshll.u32 %s1228_s12, 4  ;;  %s1123_s8 = int_to_ptr.vmem [resolvable:$false] %s1122_s8 }
 0x340   : > { %p1120_p3 = pnand %p1119_p6, %p1672_p10  ;;  %s1124_s16 = scalar_lea.vmem %s1123_s8, 256 }
 0x341   : > { %p1125_p12 = scmp.lt.s32.totalorder %s1590_s14, %s1123_s8  ;;  %p1126_p0 = scmp.lt.s32.totalorder %s1124_s16, %s1118_s18 }
 0x342   : > { %p1121_p1 = pneg %p1120_p3 }
 0x343   : > { %p1127_p5 = por %p1126_p0, %p1125_p12 }
 0x345   : > { %p1128_p7 = pnand %p1127_p5, %p1121_p1 }
 0x347   : > { %1131 = shalt.err (!%p1128_p7)
}
 0x348   : > { %s1132_s19 = scalar_lea.hbm %s1587_s10, 128  ;;  %s1136_s15 = scalar_lea.hbm %s1649_s7, 256 }
 0x349   : > { %p1133_p11 = scmp.ne.s32.totalorder %s1587_s10, %s1132_s19  ;;  %p1137_p8 = scmp.lt.u32.totalorder %s1587_s10, %s1649_s7 }
 0x34a   : > { %p1138_p9 = scmp.lt.u32.totalorder %s1136_s15, %s1132_s19  ;;  %p1140_p6 = scmp.lt.u32.totalorder %s1132_s19, %s1587_s10 }
 0x34b   : > { %p1134_p13 = pnand %p1133_p11, %p1672_p10 }
 0x34c   : > { %p1139_p4 = por %p1138_p9, %p1137_p8 }
 0x34d   : > { %p1135_p2 = pneg %p1134_p13 }
 0x34e   : > { %p1141_p3 = por %p1140_p6, %p1139_p4 }
 0x350   : > { %p1142_p1 = pnand %p1141_p3, %p1135_p2 }
 0x352   : > { %1145 = shalt.err (!%p1142_p1)
}
 0x353   : > { %818 = dma.vmem_to_hbm [thread:$0]  (%p1672_p10), %s1590_s14, 128, %s1587_s10, %s1559_s30  }
 0x354 PF: > { %s576_s13 = sand.u32 1, %s1192_s24   ;;  %p1673_p12 = scmp.ne.s32.totalorder %s1665_s9, 0 }
 0x355   : > { %p1674_p0 = scmp.ge.s32.totalorder %s1212_s29, 2  ;;  %s577_s21 = scalar_lea.sflag [#allocation4], %s576_s13 }
 0x357   : > { %p840_p5 = pnand %p1674_p0, %p1673_p12 }
 0x359   : > { %1183 = dma.done.wait (!%p840_p5), %s577_s21, 128  }
 0x35a   : > { %1185 = vsyncadd (!%p840_p5), %s577_s21, 4294967168  ;;  %s1675_s27 = sadd.s32 4294967294, %s1212_s29  }
 0x35b   : > { %s585_s18 = sand.u32 1, %s1675_s27  }
 0x35c   : > { %s586_s12 = scalar_lea.sflag [#allocation13], %s585_s18 }
 0x35d   : > { %1187 = dma.done.wait (!%p840_p5), %s586_s12, 256  }
 0x35e   : > { %1189 = vsyncadd (!%p840_p5), %s586_s12, 4294967040  ;;  %s29_s29 = sadd.s32 1, %s1212_s29   ;;  %s1676_s24 = smov %s1196_s25 }
 0x35f   : > { %p26_p10 = scmp.ge.s32.totalorder %s29_s29, 4   ;;  %s1677_s25 = smov %s1200_s26 }
 0x360   : > { %s1678_s26 = smov %s1436_s23  ;;  %s1679_s27 = smov %s1208_s28 }
 0x361   : > { %s1680_s28 = smov %s1682_s17  ;;  %28 = sbr.rel (!%p26_p10) target bundleno = 13 (0xd), region = 133 }
 0x368   :  { %600 = vsyncpa [#allocation3], 1 }
 0x369   :  { %602 = vsyncpa [#allocation3 + $0x1], 1 }
 0x36a   :  { %603 = vsyncpa [#allocation6], 1 }
 0x36b   :  { %604 = vsyncpa [#allocation9], 1 }
 0x36c   :  { %605 = vsyncpa [#allocation4], 1 }
 0x36d   :  { %607 = vsyncpa [#allocation4 + $0x1], 1 }
 0x36e   :  { %608 = vsyncpa [#allocation13], 1 }
 0x36f   :  { %610 = vsyncpa [#allocation13 + $0x1], 1 }

</bundles_post_ra>
